<compile_context>
chip_gen: v7x
topology: tpu7x:2x2x1
jax: 0.10.0
libtpu: 0.0.40
codegen_flags: <defaults>
</compile_context>

<pallas_src>
from functools import reduce

import jax
import jax.numpy as jnp
from jax import lax
from jax.experimental import pallas as pl
from jax.experimental.pallas import tpu as pltpu


# --------------------------- F.fold (exact port) -----------------------------

def fold_nchw(cols, output_size, kernel_size, stride, padding):
    """torch.nn.functional.fold: cols (N, C*kh*kw, L) -> (N, C, H, W) NCHW."""
    kh, kw = kernel_size
    sh, sw = stride
    ph, pw = padding
    H, W = output_size
    N = cols.shape[0]
    C = cols.shape[1] // (kh * kw)
    Lh = (H + 2 * ph - kh) // sh + 1
    Lw = (W + 2 * pw - kw) // sw + 1
    vals = cols.reshape(N, C, kh, kw, Lh, Lw)
    out = jnp.zeros((N, C, H + 2 * ph, W + 2 * pw), cols.dtype)
    for ki in range(kh):
        for kj in range(kw):
            out = out.at[:, :,
                         ki:ki + sh * Lh:sh,
                         kj:kj + sw * Lw:sw].add(vals[:, :, ki, kj])
    return out[:, :, ph:ph + H, pw:pw + W]


# ------------------- init-time, weight-only affine composition ---------------

def build_affine(params, Lh, Lw, hidden, output_size, kernel_size, stride, padding):
    """Compose embedding -> fold -> conv -> NCHW flatten into (W_total, b_total).

    Runs once per weight set (init time), ~15 MFLOP of plain XLA.  Returns
    W_total (Lh*Lw*hidden, C*H*W) f32 and b_total (1, C*H*W) f32.
    """
    H, W = output_size
    C = params["conv_b"].shape[0]
    L = Lh * Lw
    K = L * hidden
    emb_w, emb_b = params["emb_w"], params["emb_b"]
    conv_w, conv_b = params["conv_w"], params["conv_b"]

    def fold_conv(feat, with_bias):
        # feat: (N, L, c_out) -> (N, C*H*W) NCHW-flat
        cols = jnp.transpose(feat, (0, 2, 1))                       # (N, c_out, L)
        folded = fold_nchw(cols, output_size, kernel_size, stride, padding)
        y = lax.conv_general_dilated(
            folded, conv_w, window_strides=(1, 1), padding=[(1, 1), (1, 1)],
            dimension_numbers=("NCHW", "HWIO", "NCHW"))
        if with_bias:
            y = y + conv_b.reshape(1, C, 1, 1)
        return y.reshape(y.shape[0], C * H * W)

    # Linear part: push the K input-basis vectors through embed (no bias) ->
    # fold -> conv (no bias).
    basis = jnp.eye(K, dtype=jnp.float32).reshape(K, L, hidden)
    feat_lin = jnp.einsum("nlh,hc->nlc", basis, emb_w)               # (K, L, c_out)
    w_total = fold_conv(feat_lin, with_bias=False)                   # (K, C*H*W)

    # Affine part: the zero input with both biases applied.
    feat_b = jnp.broadcast_to(emb_b.reshape(1, 1, -1), (1, L, emb_b.shape[0]))
    b_total = fold_conv(feat_b, with_bias=True)                      # (1, C*H*W)
    return w_total, b_total


# ------------------------------- Pallas kernel -------------------------------

def _affine_kernel(x_ref, w_ref, b_ref, o_ref):
    # One lane-dense MXU push + broadcast bias; 256-lane unmasked store.
    o_ref[...] = (jnp.dot(x_ref[...], w_ref[...],
                          preferred_element_type=jnp.float32) + b_ref[...])


def soft_comp_apply(x_flat, w_total, b_total):
    n_img, K = x_flat.shape
    N = w_total.shape[1]
    return pl.pallas_call(
        _affine_kernel,
        out_shape=jax.ShapeDtypeStruct((n_img, N), jnp.float32),
        grid=(1,),                                   # single pipeline step
        in_specs=[
            pl.BlockSpec((n_img, K), lambda i: (0, 0)),
            pl.BlockSpec((K, N), lambda i: (0, 0)),
            pl.BlockSpec((1, N), lambda i: (0, 0)),
        ],
        out_specs=pl.BlockSpec((n_img, N), lambda i: (0, 0)),
        compiler_params=pltpu.CompilerParams(
            dimension_semantics=("arbitrary",),      # 1 step: no megacore split
            vmem_limit_bytes=16 * 1024 * 1024,       # resident footprint ~1 MB
        ),
    )(x_flat, w_total, b_total)


def soft_comp_forward(x, t, output_size, w_total, b_total):
    """x: (b, t, Lh, Lw, hidden) f32.  Returns (b*t, C, H, W) NCHW like PyTorch."""
    b = x.shape[0]
    n_img = b * t
    H, W = output_size
    C = w_total.shape[1] // (H * W)
    x_flat = x.reshape(n_img, -1)                    # (b*t, Lh*Lw*hidden), metadata only
    out_flat = soft_comp_apply(x_flat, w_total, b_total)
    return out_flat.reshape(n_img, C, H, W)          # columns already NCHW-ordered


# ---------------------- independent pure-JAX reference -----------------------

def reference_forward(x, t, output_size, params, kernel_size, stride, padding):
    b_ = x.shape[0]
    c_ = x.shape[-1]
    x2 = x.reshape(b_, -1, c_)
    feat = x2 @ params["emb_w"] + params["emb_b"]
    c_out = feat.shape[-1]
    feat = feat.reshape(b_ * t, -1, c_out).transpose(0, 2, 1)
    folded = fold_nchw(feat, output_size, kernel_size, stride, padding)
    x_nhwc = jnp.transpose(folded, (0, 2, 3, 1))
    out_nhwc = lax.conv_general_dilated(
        x_nhwc, params["conv_w"], window_strides=(1, 1),
        padding=[(1, 1), (1, 1)],
        dimension_numbers=("NHWC", "HWIO", "NHWC"),
    ) + params["conv_b"]
    return jnp.transpose(out_nhwc, (0, 3, 1, 2))


# ----------------------------------- main -------------------------------------

if __name__ == "__main__":
    # Module hyper-params (consistent with SoftCompNew semantics)
    channel = 4
    hidden = 32
    kernel_size = (3, 3)
    stride = (2, 2)
    padding = (1, 1)
    c_out = reduce(lambda a, b: a * b, kernel_size) * channel        # 36

    # Input geometry
    b, t = 2, 2
    output_size = (8, 8)
    Lh = (output_size[0] + 2 * padding[0] - kernel_size[0]) // stride[0] + 1  # 4
    Lw = (output_size[1] + 2 * padding[1] - kernel_size[1]) // stride[1] + 1  # 4

    key = jax.random.PRNGKey(0)
    k1, k2, k3, k4, k5 = jax.random.split(key, 5)
    params = {
        "emb_w": jax.random.normal(k1, (hidden, c_out), jnp.float32) * 0.05,
        "emb_b": jax.random.normal(k2, (c_out,), jnp.float32) * 0.05,
        "conv_w": jax.random.normal(k3, (3, 3, channel, channel), jnp.float32) * 0.05,
        "conv_b": jax.random.normal(k4, (channel,), jnp.float32) * 0.05,
    }
    # x: (b, t, Lh, Lw, hidden) -- the 5-D tensor SoftCompNew.forward expects
    x = jax.random.normal(k5, (b, t, Lh, Lw, hidden), jnp.float32)

    # Init-time, weight-only composition (hoisted out of the per-call path).
    w_total, b_total = build_affine(params, Lh, Lw, hidden, output_size,
                                    kernel_size, stride, padding)
    w_total = jax.block_until_ready(w_total)
    b_total = jax.block_until_ready(b_total)

    out = soft_comp_forward(x, t, output_size, w_total, b_total)
    out = jax.block_until_ready(out)

    ref = reference_forward(x, t, output_size, params, kernel_size, stride, padding)
    ref = jax.block_until_ready(ref)

    assert out.shape == (b * t, channel, output_size[0], output_size[1]), out.shape
    assert jnp.allclose(out, ref, atol=1e-4, rtol=1e-4), float(jnp.max(jnp.abs(out - ref)))

    print("KERNEL_OK")
</pallas_src>

<mosaic_0001>
module attributes {stable_mosaic.version = 11 : i64} {
  func.func @_affine_kernel(%arg0: i32, %arg1: memref<4x512xf32, #tpu.memory_space<vmem>>, %arg2: memref<512x256xf32, #tpu.memory_space<vmem>>, %arg3: memref<1x256xf32, #tpu.memory_space<vmem>>, %arg4: memref<4x256xf32, #tpu.memory_space<vmem>>) attributes {dimension_semantics = [#tpu.dimension_semantics<arbitrary>], iteration_bounds = array<i64: 1>, scalar_prefetch = 0 : i64, scratch_operands = 0 : i64, tpu.core_type = #tpu.core_type<tc>, window_params = [{pipeline_mode = #tpu.pipeline_mode<synchronous>, transform_indices = @transform_0, window_bounds = array<i64: 4, 512>}, {pipeline_mode = #tpu.pipeline_mode<synchronous>, transform_indices = @transform_1, window_bounds = array<i64: 512, 256>}, {pipeline_mode = #tpu.pipeline_mode<synchronous>, transform_indices = @transform_2, window_bounds = array<i64: 1, 256>}, {pipeline_mode = #tpu.pipeline_mode<synchronous>, transform_indices = @transform_3, window_bounds = array<i64: 4, 256>}]} {
    %c0 = arith.constant 0 : index
    %c0_0 = arith.constant 0 : index
    %0 = vector.load %arg1[%c0, %c0_0] : memref<4x512xf32, #tpu.memory_space<vmem>>, vector<4x512xf32>
    %c0_1 = arith.constant 0 : index
    %c0_2 = arith.constant 0 : index
    %1 = vector.load %arg2[%c0_1, %c0_2] : memref<512x256xf32, #tpu.memory_space<vmem>>, vector<512x256xf32>
    %cst = arith.constant dense<0.000000e+00> : vector<4x256xf32>
    %2 = tpu.matmul %0, %1, %cst {dimension_numbers = #tpu.dot_dimension_numbers<[1], [0], [0], [1], [0, 0, 1, 1], [], []>} : vector<4x512xf32>, vector<512x256xf32>, vector<4x256xf32> -> vector<4x256xf32>
    %c0_3 = arith.constant 0 : index
    %c0_4 = arith.constant 0 : index
    %3 = vector.load %arg3[%c0_3, %c0_4] : memref<1x256xf32, #tpu.memory_space<vmem>>, vector<1x256xf32>
    %4 = vector.broadcast %3 : vector<1x256xf32> to vector<4x256xf32>
    %5 = arith.addf %2, %4 : vector<4x256xf32>
    %c0_5 = arith.constant 0 : index
    %c0_6 = arith.constant 0 : index
    %6 = vector.load %arg4[%c0_5, %c0_6] : memref<4x256xf32, #tpu.memory_space<vmem>>, vector<4x256xf32>
    tpu.vector_store %arg4[%c0_5, %c0_6], %5 {strides = array<i32>} : memref<4x256xf32, #tpu.memory_space<vmem>>, vector<4x256xf32>,
    return
  }
  func.func @transform_0(%arg0: i32) -> (i32, i32) {
    %c0_i32 = arith.constant 0 : i32
    %c0_i32_0 = arith.constant 0 : i32
    %c0_i32_1 = arith.constant 0 : i32
    return %c0_i32, %c0_i32_0 : i32, i32
  }
  func.func @transform_1(%arg0: i32) -> (i32, i32) {
    %c0_i32 = arith.constant 0 : i32
    %c0_i32_0 = arith.constant 0 : i32
    %c0_i32_1 = arith.constant 0 : i32
    return %c0_i32, %c0_i32_0 : i32, i32
  }
  func.func @transform_2(%arg0: i32) -> (i32, i32) {
    %c0_i32 = arith.constant 0 : i32
    %c0_i32_0 = arith.constant 0 : i32
    %c0_i32_1 = arith.constant 0 : i32
    return %c0_i32, %c0_i32_0 : i32, i32
  }
  func.func @transform_3(%arg0: i32) -> (i32, i32) {
    %c0_i32 = arith.constant 0 : i32
    %c0_i32_0 = arith.constant 0 : i32
    %c0_i32_1 = arith.constant 0 : i32
    return %c0_i32, %c0_i32_0 : i32, i32
  }
}

</mosaic_0001>

<bundles_post_ra>
// kernel: tpu_custom_call.1
= control target key start
LH: loop header
LB: loop body
LE: loop exit
PB: predicated region body
PF: predicated region fallthrough
CT: control target
= control target key end

     0   :  { %8 = vsyncpa [#allocation3], 0  ;;  %s644_s0 = inlined_call_operand.hbm [shape: f32[4,512], index: 0, kind: input, shape index: {}]   ;;  %s645_s1 = inlined_call_operand.hbm [shape: f32[512,256], index: 1, kind: input, shape index: {}]   ;;  %s646_s2 = inlined_call_operand.vmem [shape: f32[1,256], index: 2, kind: input, shape index: {}]   ;;  %s647_s3 = inlined_call_operand.hbm [shape: f32[4,256], index: 3, kind: output, shape index: {}]  }
   0x1   :  { %9 = vsyncpa [#allocation6], 0 }
   0x2   :  { %10 = vsyncpa [#allocation4], 0  ;;  %s563_s12 = smov [#allocation2]   ;;  %s564_s14 = smov [#allocation5]  }
   0x3   :  { %s17_s13 = sshll.u32 %s563_s12, 4  ;;  %s26_s15 = sshll.u32 %s564_s14, 4  ;;  %s18_s13 = int_to_ptr.vmem [resolvable:$true] %s17_s13  ;;  %s588_s15 = int_to_ptr.vmem [resolvable:$true] %s26_s15 }
   0x4   :  { %s491_s18 = scalar_lea.hbm %s644_s0, 256 }
   0x5   :  { %p492_p0 = scmp.ne.s32.totalorder %s644_s0, %s491_s18  ;;  %p495_p1 = scmp.lt.u32.totalorder %s491_s18, %s644_s0 }
   0x7   :  { %p497_p2 = pnand %p495_p1, %p492_p0 }
   0x9   :  { %500 = shalt.err (!%p497_p2)
}
   0xa   :  { %s501_s23 = scalar_lea.vmem %s18_s13, 256  ;;  %p506_p4 = scmp.lt.s32.totalorder %s18_s13, %s18_s13 }
   0xb   :  { %p502_p3 = scmp.ne.s32.totalorder %s18_s13, %s501_s23  ;;  %p507_p5 = scmp.lt.s32.totalorder %s501_s23, %s501_s23 }
   0xd   :  { %p508_p6 = por %p507_p5, %p506_p4 }
   0xf   :  { %p509_p7 = pnand %p508_p6, %p502_p3 }
  0x11   :  { %512 = shalt.err (!%p509_p7)
}
  0x12   :  { %20 = dma.hbm_to_vmem [thread:$0]  %s644_s0, 256, %s18_s13, [#allocation3]  }
  0x13   :  { %s513_s28 = scalar_lea.hbm %s645_s1, 16384 }
  0x14   :  { %p514_p8 = scmp.ne.s32.totalorder %s645_s1, %s513_s28  ;;  %p517_p9 = scmp.lt.u32.totalorder %s513_s28, %s645_s1 }
  0x16   :  { %p519_p10 = pnand %p517_p9, %p514_p8 }
  0x18   :  { %522 = shalt.err (!%p519_p10)
}
  0x19   :  { %s523_s6 = scalar_lea.vmem %s588_s15, 16384  ;;  %p528_p12 = scmp.lt.s32.totalorder %s588_s15, %s588_s15 }
  0x1a   :  { %p524_p11 = scmp.ne.s32.totalorder %s588_s15, %s523_s6  ;;  %p529_p13 = scmp.lt.s32.totalorder %s523_s6, %s523_s6 }
  0x1c   :  { %p530_p0 = por %p529_p13, %p528_p12 }
  0x1e   :  { %p531_p1 = pnand %p530_p0, %p524_p11 }
  0x20   :  { %534 = shalt.err (!%p531_p1)
}
  0x21   :  { %s565_s0 = smov 256   ;;  %s566_s7 = smov 16  }
  0x22   :  { %32 = dma.hbm_to_vmem [thread:$0]  %s645_s1, 16384, %s588_s15, [#allocation6], %s565_s0, %s565_s0, %s566_s7  }
  0x23   :  { %557 = dma.done.wait [#allocation3], 256  }
  0x24   :  { %558 = vsyncadd [#allocation3], 4294967040 }
  0x25   :  { %559 = dma.done.wait [#allocation6], 16384  }
  0x26   :  { %560 = vsyncadd [#allocation6], 4294950912  ;;  %v44_v0 = vld [vmem:[#allocation5 + $0x8] sm:$0xff]  ;;  %v46_v1 = vld [vmem:[#allocation5 + $0x18] sm:$0xff]  ;;  %s567_s11 = smov [#allocation7]  }
  0x27   :  { %v43_v2 = vld [vmem:[#allocation5] sm:$0xff]  ;;  %v352_v3 = vpack.c.bf16 %v46_v1, %v44_v0  ;;  %v45_v4 = vld [vmem:[#allocation5 + $0x10] sm:$0xff]  ;;  %v108_v5 = vld [vmem:[#allocation5 + $0x208] sm:$0xff]  ;;  %s342_s12 = sshll.u32 %s567_s11, 4  ;;  %s343_s12 = int_to_ptr.vmem [resolvable:$true] %s342_s12 }
  0x28   :  { %v110_v6 = vld [vmem:[#allocation5 + $0x218] sm:$0xff]  ;;  %v354_v7 = vpack.c.bf16 %v45_v4, %v43_v2  ;;  %v107_v9 = vld [vmem:[#allocation5 + $0x200] sm:$0xff]  ;;  %v109_v10 = vld [vmem:[#allocation5 + $0x210] sm:$0xff]  ;;  %s535_s13 = scalar_lea.vmem %s343_s12, 128  ;;  %p540_p3 = scmp.lt.s32.totalorder %s343_s12, %s343_s12 }
  0x29   :  { %v416_v8 = vpack.c.bf16 %v110_v6, %v108_v5  ;;  %v48_v11 = vld [vmem:[#allocation5 + $0x28] sm:$0xff]  ;;  %353 = vmatprep.subr.bf16.mxu1 %v352_v3  ;;  %v418_v12 = vpack.c.bf16 %v109_v10, %v107_v9  ;;  %v50_v13 = vld [vmem:[#allocation5 + $0x38] sm:$0xff]  ;;  %v47_v14 = vld [vmem:[#allocation5 + $0x20] sm:$0xff]  ;;  %p536_p2 = scmp.ne.s32.totalorder %s343_s12, %s535_s13  ;;  %p541_p4 = scmp.lt.s32.totalorder %s535_s13, %s535_s13 }
  0x2a   :  { %v49_v15 = vld [vmem:[#allocation5 + $0x30] sm:$0xff]  ;;  %355 = vmatpush1.bf16.msra.mxu1 %v354_v7  ;;  %v356_v16 = vpack.c.bf16 %v50_v13, %v48_v11  ;;  %v112_v18 = vld [vmem:[#allocation5 + $0x228] sm:$0xff]  ;;  %v114_v19 = vld [vmem:[#allocation5 + $0x238] sm:$0xff] }
  0x2b   :  { %417 = vmatprep.subr.bf16.mxu0 %v416_v8  ;;  %v358_v17 = vpack.c.bf16 %v49_v15, %v47_v14  ;;  %v111_v20 = vld [vmem:[#allocation5 + $0x220] sm:$0xff]  ;;  %v420_v21 = vpack.c.bf16 %v114_v19, %v112_v18  ;;  %v113_v22 = vld [vmem:[#allocation5 + $0x230] sm:$0xff]  ;;  %v52_v23 = vld [vmem:[#allocation5 + $0x48] sm:$0xff]  ;;  %p542_p5 = por %p541_p4, %p540_p3 }
  0x2c   :  { %419 = vmatpush1.bf16.msra.mxu0 %v418_v12  ;;  %v54_v24 = vld [vmem:[#allocation5 + $0x58] sm:$0xff]  ;;  %357 = vmatprep.subr.bf16.mxu1 %v356_v16  ;;  %v422_v25 = vpack.c.bf16 %v113_v22, %v111_v20  ;;  %v51_v27 = vld [vmem:[#allocation5 + $0x40] sm:$0xff]  ;;  %v53_v28 = vld [vmem:[#allocation5 + $0x50] sm:$0xff] }
  0x2d   :  { %v360_v26 = vpack.c.bf16 %v54_v24, %v52_v23  ;;  %v116_v29 = vld [vmem:[#allocation5 + $0x248] sm:$0xff]  ;;  %421 = vmatprep.subr.bf16.mxu0 %v420_v21  ;;  %v118_v30 = vld [vmem:[#allocation5 + $0x258] sm:$0xff]  ;;  %v115_v31 = vld [vmem:[#allocation5 + $0x240] sm:$0xff]  ;;  %v362_v33 = vpack.c.bf16 %v53_v28, %v51_v27  ;;  %p543_p6 = pnand %p542_p5, %p536_p2 }
  0x2e   :  { %v117_v32 = vld [vmem:[#allocation5 + $0x250] sm:$0xff]  ;;  %359 = vmatpush1.bf16.msra.mxu1 %v358_v17  ;;  %v424_v34 = vpack.c.bf16 %v118_v30, %v116_v29  ;;  %v56_v35 = vld [vmem:[#allocation5 + $0x68] sm:$0xff]  ;;  %v58_v36 = vld [vmem:[#allocation5 + $0x78] sm:$0xff] }
  0x2f   :  { %v55_v37 = vld [vmem:[#allocation5 + $0x60] sm:$0xff]  ;;  %361 = vmatprep.subr.bf16.mxu1 %v360_v26  ;;  %v426_v38 = vpack.c.bf16 %v117_v32, %v115_v31  ;;  %v364_v39 = vpack.c.bf16 %v58_v36, %v56_v35  ;;  %v57_v40 = vld [vmem:[#allocation5 + $0x70] sm:$0xff]  ;;  %v120_v41 = vld [vmem:[#allocation5 + $0x268] sm:$0xff] }
  0x30   :  { %423 = vmatpush1.bf16.msra.mxu0 %v422_v25  ;;  %v122_v42 = vld [vmem:[#allocation5 + $0x278] sm:$0xff]  ;;  %v119_v44 = vld [vmem:[#allocation5 + $0x260] sm:$0xff]  ;;  %v121_v45 = vld [vmem:[#allocation5 + $0x270] sm:$0xff]  ;;  %v366_v48 = vpack.c.bf16 %v57_v40, %v55_v37 }
  0x31   :  { %425 = vmatprep.subr.bf16.mxu0 %v424_v34  ;;  %v428_v43 = vpack.c.bf16 %v122_v42, %v120_v41  ;;  %v60_v46 = vld [vmem:[#allocation5 + $0x88] sm:$0xff]  ;;  %v62_v47 = vld [vmem:[#allocation5 + $0x98] sm:$0xff]  ;;  %v430_v51 = vpack.c.bf16 %v121_v45, %v119_v44  ;;  %v59_v53 = vld [vmem:[#allocation5 + $0x80] sm:$0xff] }
  0x32   :  { %363 = vmatpush1.bf16.msra.mxu1 %v362_v33  ;;  %v124_v49 = vld [vmem:[#allocation5 + $0x288] sm:$0xff]  ;;  %v126_v50 = vld [vmem:[#allocation5 + $0x298] sm:$0xff]  ;;  %v368_v52 = vpack.c.bf16 %v62_v47, %v60_v46  ;;  %v61_v54 = vld [vmem:[#allocation5 + $0x90] sm:$0xff] }
  0x33   :  { %365 = vmatprep.subr.bf16.mxu1 %v364_v39  ;;  %v123_v55 = vld [vmem:[#allocation5 + $0x280] sm:$0xff]  ;;  %v432_v56 = vpack.c.bf16 %v126_v50, %v124_v49  ;;  %v125_v57 = vld [vmem:[#allocation5 + $0x290] sm:$0xff]  ;;  %v64_v58 = vld [vmem:[#allocation5 + $0xa8] sm:$0xff]  ;;  %v370_v62 = vpack.c.bf16 %v61_v54, %v59_v53 }
  0x34   :  { %427 = vmatpush1.bf16.msra.mxu0 %v426_v38  ;;  %v66_v59 = vld [vmem:[#allocation5 + $0xb8] sm:$0xff]  ;;  %v128_v60 = vld [vmem:[#allocation5 + $0x2a8] sm:$0xff]  ;;  %v434_v63 = vpack.c.bf16 %v125_v57, %v123_v55  ;;  %v63_v1 = vld [vmem:[#allocation5 + $0xa0] sm:$0xff] }
  0x35   :  { %429 = vmatprep.subr.bf16.mxu0 %v428_v43  ;;  %v130_v61 = vld [vmem:[#allocation5 + $0x2b8] sm:$0xff]  ;;  %v372_v0 = vpack.c.bf16 %v66_v59, %v64_v58  ;;  %v65_v2 = vld [vmem:[#allocation5 + $0xb0] sm:$0xff]  ;;  %v127_v3 = vld [vmem:[#allocation5 + $0x2a0] sm:$0xff] }
  0x36   :  { %367 = vmatpush1.bf16.msra.mxu1 %v366_v48  ;;  %v436_v4 = vpack.c.bf16 %v130_v61, %v128_v60  ;;  %v129_v5 = vld [vmem:[#allocation5 + $0x2b0] sm:$0xff]  ;;  %v68_v6 = vld [vmem:[#allocation5 + $0xc8] sm:$0xff]  ;;  %v70_v7 = vld [vmem:[#allocation5 + $0xd8] sm:$0xff]  ;;  %v374_v10 = vpack.c.bf16 %v65_v2, %v63_v1 }
  0x37   :  { %369 = vmatprep.subr.bf16.mxu1 %v368_v52  ;;  %v132_v8 = vld [vmem:[#allocation5 + $0x2c8] sm:$0xff]  ;;  %v134_v9 = vld [vmem:[#allocation5 + $0x2d8] sm:$0xff]  ;;  %v438_v11 = vpack.c.bf16 %v129_v5, %v127_v3  ;;  %v376_v12 = vpack.c.bf16 %v70_v7, %v68_v6  ;;  %v67_v13 = vld [vmem:[#allocation5 + $0xc0] sm:$0xff] }
  0x38   :  { %431 = vmatpush1.bf16.msra.mxu0 %v430_v51  ;;  %v69_v14 = vld [vmem:[#allocation5 + $0xd0] sm:$0xff]  ;;  %v131_v15 = vld [vmem:[#allocation5 + $0x2c0] sm:$0xff]  ;;  %v440_v16 = vpack.c.bf16 %v134_v9, %v132_v8  ;;  %v72_v18 = vld [vmem:[#allocation5 + $0xe8] sm:$0xff] }
  0x39   :  { %433 = vmatprep.subr.bf16.mxu0 %v432_v56  ;;  %v133_v17 = vld [vmem:[#allocation5 + $0x2d0] sm:$0xff]  ;;  %v74_v19 = vld [vmem:[#allocation5 + $0xf8] sm:$0xff]  ;;  %v136_v20 = vld [vmem:[#allocation5 + $0x2e8] sm:$0xff]  ;;  %v378_v22 = vpack.c.bf16 %v69_v14, %v67_v13 }
  0x3a   :  { %371 = vmatpush1.bf16.msra.mxu1 %v370_v62  ;;  %v138_v21 = vld [vmem:[#allocation5 + $0x2f8] sm:$0xff]  ;;  %v442_v23 = vpack.c.bf16 %v133_v17, %v131_v15  ;;  %v380_v24 = vpack.c.bf16 %v74_v19, %v72_v18  ;;  %v71_v25 = vld [vmem:[#allocation5 + $0xe0] sm:$0xff]  ;;  %v73_v26 = vld [vmem:[#allocation5 + $0xf0] sm:$0xff] }
  0x3b   :  { %373 = vmatprep.subr.bf16.mxu1 %v372_v0  ;;  %v135_v27 = vld [vmem:[#allocation5 + $0x2e0] sm:$0xff]  ;;  %v444_v28 = vpack.c.bf16 %v138_v21, %v136_v20  ;;  %v137_v29 = vld [vmem:[#allocation5 + $0x2f0] sm:$0xff]  ;;  %v76_v30 = vld [vmem:[#allocation5 + $0x108] sm:$0xff]  ;;  %v382_v34 = vpack.c.bf16 %v73_v26, %v71_v25 }
  0x3c   :  { %435 = vmatpush1.bf16.msra.mxu0 %v434_v63  ;;  %v78_v31 = vld [vmem:[#allocation5 + $0x118] sm:$0xff]  ;;  %v140_v32 = vld [vmem:[#allocation5 + $0x308] sm:$0xff]  ;;  %v446_v35 = vpack.c.bf16 %v137_v29, %v135_v27  ;;  %v75_v37 = vld [vmem:[#allocation5 + $0x100] sm:$0xff] }
  0x3d   :  { %437 = vmatprep.subr.bf16.mxu0 %v436_v4  ;;  %v142_v33 = vld [vmem:[#allocation5 + $0x318] sm:$0xff]  ;;  %v384_v36 = vpack.c.bf16 %v78_v31, %v76_v30  ;;  %v77_v38 = vld [vmem:[#allocation5 + $0x110] sm:$0xff]  ;;  %v139_v39 = vld [vmem:[#allocation5 + $0x300] sm:$0xff] }
  0x3e   :  { %375 = vmatpush1.bf16.msra.mxu1 %v374_v10  ;;  %v448_v40 = vpack.c.bf16 %v142_v33, %v140_v32  ;;  %v141_v41 = vld [vmem:[#allocation5 + $0x310] sm:$0xff]  ;;  %v80_v42 = vld [vmem:[#allocation5 + $0x128] sm:$0xff]  ;;  %v82_v43 = vld [vmem:[#allocation5 + $0x138] sm:$0xff]  ;;  %v386_v46 = vpack.c.bf16 %v77_v38, %v75_v37 }
  0x3f   :  { %377 = vmatprep.subr.bf16.mxu1 %v376_v12  ;;  %v144_v44 = vld [vmem:[#allocation5 + $0x328] sm:$0xff]  ;;  %v146_v45 = vld [vmem:[#allocation5 + $0x338] sm:$0xff]  ;;  %v450_v47 = vpack.c.bf16 %v141_v41, %v139_v39  ;;  %v388_v48 = vpack.c.bf16 %v82_v43, %v80_v42  ;;  %v79_v49 = vld [vmem:[#allocation5 + $0x120] sm:$0xff] }
  0x40   :  { %439 = vmatpush1.bf16.msra.mxu0 %v438_v11  ;;  %v81_v50 = vld [vmem:[#allocation5 + $0x130] sm:$0xff]  ;;  %v143_v51 = vld [vmem:[#allocation5 + $0x320] sm:$0xff]  ;;  %v452_v52 = vpack.c.bf16 %v146_v45, %v144_v44  ;;  %v84_v54 = vld [vmem:[#allocation5 + $0x148] sm:$0xff] }
  0x41   :  { %441 = vmatprep.subr.bf16.mxu0 %v440_v16  ;;  %v145_v53 = vld [vmem:[#allocation5 + $0x330] sm:$0xff]  ;;  %v86_v55 = vld [vmem:[#allocation5 + $0x158] sm:$0xff]  ;;  %v148_v56 = vld [vmem:[#allocation5 + $0x348] sm:$0xff]  ;;  %v390_v58 = vpack.c.bf16 %v81_v50, %v79_v49 }
  0x42   :  { %379 = vmatpush1.bf16.msra.mxu1 %v378_v22  ;;  %v150_v57 = vld [vmem:[#allocation5 + $0x358] sm:$0xff]  ;;  %v454_v59 = vpack.c.bf16 %v145_v53, %v143_v51  ;;  %v392_v60 = vpack.c.bf16 %v86_v55, %v84_v54  ;;  %v83_v61 = vld [vmem:[#allocation5 + $0x140] sm:$0xff]  ;;  %v85_v62 = vld [vmem:[#allocation5 + $0x150] sm:$0xff] }
  0x43   :  { %381 = vmatprep.subr.bf16.mxu1 %v380_v24  ;;  %v147_v63 = vld [vmem:[#allocation5 + $0x340] sm:$0xff]  ;;  %v456_v0 = vpack.c.bf16 %v150_v57, %v148_v56  ;;  %v149_v1 = vld [vmem:[#allocation5 + $0x350] sm:$0xff]  ;;  %v88_v2 = vld [vmem:[#allocation5 + $0x168] sm:$0xff]  ;;  %v394_v6 = vpack.c.bf16 %v85_v62, %v83_v61 }
  0x44   :  { %443 = vmatpush1.bf16.msra.mxu0 %v442_v23  ;;  %v90_v3 = vld [vmem:[#allocation5 + $0x178] sm:$0xff]  ;;  %v152_v4 = vld [vmem:[#allocation5 + $0x368] sm:$0xff]  ;;  %v87_v7 = vld [vmem:[#allocation5 + $0x160] sm:$0xff]  ;;  %v458_v8 = vpack.c.bf16 %v149_v1, %v147_v63 }
  0x45   :  { %445 = vmatprep.subr.bf16.mxu0 %v444_v28  ;;  %v154_v5 = vld [vmem:[#allocation5 + $0x378] sm:$0xff]  ;;  %v396_v9 = vpack.c.bf16 %v90_v3, %v88_v2  ;;  %v89_v10 = vld [vmem:[#allocation5 + $0x170] sm:$0xff]  ;;  %v151_v11 = vld [vmem:[#allocation5 + $0x360] sm:$0xff] }
  0x46   :  { %383 = vmatpush1.bf16.msra.mxu1 %v382_v34  ;;  %v153_v12 = vld [vmem:[#allocation5 + $0x370] sm:$0xff]  ;;  %v460_v13 = vpack.c.bf16 %v154_v5, %v152_v4  ;;  %v92_v14 = vld [vmem:[#allocation5 + $0x188] sm:$0xff]  ;;  %v94_v15 = vld [vmem:[#allocation5 + $0x198] sm:$0xff]  ;;  %v398_v21 = vpack.c.bf16 %v89_v10, %v87_v7  ;;  %v173_v4 = vlaneseq }
  0x47   :  { %385 = vmatprep.subr.bf16.mxu1 %v384_v36  ;;  %v619_v16 = vld [vmem:[#allocation2] sm:$0xff]  ;;  %v156_v17 = vld [vmem:[#allocation5 + $0x388] sm:$0xff]  ;;  %v158_v18 = vld [vmem:[#allocation5 + $0x398] sm:$0xff]  ;;  %v462_v23 = vpack.c.bf16 %v153_v12, %v151_v11  ;;  %v400_v24 = vpack.c.bf16 %v94_v15, %v92_v14 }
  0x48   :  { %447 = vmatpush1.bf16.msra.mxu0 %v446_v35  ;;  %v185_v19 = vcombine.high %v619_v16, %v619_v16  ;;  %v623_v20 = vld [vmem:[#allocation2 + $0x8] sm:$0xff]  ;;  %v91_v25 = vld [vmem:[#allocation5 + $0x180] sm:$0xff]  ;;  %v93_v26 = vld [vmem:[#allocation5 + $0x190] sm:$0xff]  ;;  %v464_v28 = vpack.c.bf16 %v158_v18, %v156_v17  ;;  %v174_v5 = vshrl.u32 %v173_v4, 7 }
  0x49   :  { %449 = vmatprep.subr.bf16.mxu0 %v448_v40  ;;  %v186_v22 = vcombine.high %v623_v20, %v623_v20  ;;  %v155_v27 = vld [vmem:[#allocation5 + $0x380] sm:$0xff]  ;;  %v157_v29 = vld [vmem:[#allocation5 + $0x390] sm:$0xff]  ;;  %v96_v30 = vld [vmem:[#allocation5 + $0x1a8] sm:$0xff]  ;;  %v402_v34 = vpack.c.bf16 %v93_v26, %v91_v25 }
  0x4a   :  { %387 = vmatpush1.bf16.msra.mxu1 %v386_v46  ;;  %v98_v31 = vld [vmem:[#allocation5 + $0x1b8] sm:$0xff]  ;;  %253 = vmatprep.mubr.f32.mxu1 %v185_v19  ;;  %v160_v32 = vld [vmem:[#allocation5 + $0x3a8] sm:$0xff]  ;;  %v466_v35 = vpack.c.bf16 %v157_v29, %v155_v27  ;;  %v95_v37 = vld [vmem:[#allocation5 + $0x1a0] sm:$0xff] }
  0x4b   :  { %389 = vmatprep.subr.bf16.mxu1 %v388_v48  ;;  %v162_v33 = vld [vmem:[#allocation5 + $0x3b8] sm:$0xff]  ;;  %324 = vmatprep.mubr.f32.mxu0 %v186_v22  ;;  %v404_v36 = vpack.c.bf16 %v98_v31, %v96_v30  ;;  %v97_v38 = vld [vmem:[#allocation5 + $0x1b0] sm:$0xff]  ;;  %v159_v39 = vld [vmem:[#allocation5 + $0x3a0] sm:$0xff] }
  0x4c   :  { %451 = vmatpush1.bf16.msra.mxu0 %v450_v47  ;;  %v468_v40 = vpack.c.bf16 %v162_v33, %v160_v32  ;;  %v161_v41 = vld [vmem:[#allocation5 + $0x3b0] sm:$0xff]  ;;  %v100_v42 = vld [vmem:[#allocation5 + $0x1c8] sm:$0xff]  ;;  %v102_v43 = vld [vmem:[#allocation5 + $0x1d8] sm:$0xff]  ;;  %v406_v46 = vpack.c.bf16 %v97_v38, %v95_v37 }
  0x4d   :  { %453 = vmatprep.subr.bf16.mxu0 %v452_v52  ;;  %v164_v44 = vld [vmem:[#allocation5 + $0x3c8] sm:$0xff]  ;;  %v166_v45 = vld [vmem:[#allocation5 + $0x3d8] sm:$0xff]  ;;  %v470_v47 = vpack.c.bf16 %v161_v41, %v159_v39  ;;  %v408_v48 = vpack.c.bf16 %v102_v43, %v100_v42  ;;  %v99_v49 = vld [vmem:[#allocation5 + $0x1c0] sm:$0xff] }
  0x4e   :  { %391 = vmatpush1.bf16.msra.mxu1 %v390_v58  ;;  %v101_v50 = vld [vmem:[#allocation5 + $0x1d0] sm:$0xff]  ;;  %v163_v51 = vld [vmem:[#allocation5 + $0x3c0] sm:$0xff]  ;;  %v472_v52 = vpack.c.bf16 %v166_v45, %v164_v44  ;;  %v104_v54 = vld [vmem:[#allocation5 + $0x1e8] sm:$0xff] }
  0x4f   :  { %393 = vmatprep.subr.bf16.mxu1 %v392_v60  ;;  %v165_v53 = vld [vmem:[#allocation5 + $0x3d0] sm:$0xff]  ;;  %v106_v55 = vld [vmem:[#allocation5 + $0x1f8] sm:$0xff]  ;;  %v168_v56 = vld [vmem:[#allocation5 + $0x3e8] sm:$0xff]  ;;  %v410_v58 = vpack.c.bf16 %v101_v50, %v99_v49 }
  0x50   :  { %455 = vmatpush1.bf16.msra.mxu0 %v454_v59  ;;  %v170_v57 = vld [vmem:[#allocation5 + $0x3f8] sm:$0xff]  ;;  %v474_v59 = vpack.c.bf16 %v165_v53, %v163_v51  ;;  %v412_v60 = vpack.c.bf16 %v106_v55, %v104_v54  ;;  %v103_v61 = vld [vmem:[#allocation5 + $0x1e0] sm:$0xff]  ;;  %v105_v62 = vld [vmem:[#allocation5 + $0x1f0] sm:$0xff] }
  0x51   :  { %457 = vmatprep.subr.bf16.mxu0 %v456_v0  ;;  %v476_v63 = vpack.c.bf16 %v170_v57, %v168_v56  ;;  %v167_v0 = vld [vmem:[#allocation5 + $0x3e0] sm:$0xff]  ;;  %v169_v1 = vld [vmem:[#allocation5 + $0x3f0] sm:$0xff]  ;;  %v414_v2 = vpack.c.bf16 %v105_v62, %v103_v61 }
  0x52   :  { %395 = vmatpush1.bf16.msra.mxu1 %v394_v6  ;;  %v478_v3 = vpack.c.bf16 %v169_v1, %v167_v0  ;;  %v175_v6 = vsub.s32 0, %v174_v5  ;;  %v171_v7 = vld [vmem:[%s646_s2] sm:$0x3] }
  0x53   :  { %397 = vmatprep.subr.bf16.mxu1 %v396_v9 }
  0x54   :  { %459 = vmatpush1.bf16.msra.mxu0 %v458_v8  ;;  %v179_v8 = vsub.s32 1, %v174_v5  ;;  %v176_v9 = vrot.slane %v171_v7, %v175_v6 }
  0x55   :  { %461 = vmatprep.subr.bf16.mxu0 %v460_v13 }
  0x56   :  { %399 = vmatpush1.bf16.msra.mxu1 %v398_v21  ;;  %v180_v10 = vrot.slane %v171_v7, %v179_v8 }
  0x57   :  { %401 = vmatprep.subr.bf16.mxu1 %v400_v24 }
  0x58   :  { %463 = vmatpush1.bf16.msra.mxu0 %v462_v23 }
  0x59   :  { %465 = vmatprep.subr.bf16.mxu0 %v464_v28 }
  0x5a   :  { %403 = vmatpush1.bf16.msra.mxu1 %v402_v34 }
  0x5b   :  { %405 = vmatprep.subr.bf16.mxu1 %v404_v36 }
  0x5c   :  { %467 = vmatpush1.bf16.msra.mxu0 %v466_v35 }
  0x5d   :  { %469 = vmatprep.subr.bf16.mxu0 %v468_v40 }
  0x5e   :  { %407 = vmatpush1.bf16.msra.mxu1 %v406_v46 }
  0x5f   :  { %409 = vmatprep.subr.bf16.mxu1 %v408_v48 }
  0x60   :  { %471 = vmatpush1.bf16.msra.mxu0 %v470_v47 }
  0x61   :  { %473 = vmatprep.subr.bf16.mxu0 %v472_v52 }
  0x62   :  { %411 = vmatpush1.bf16.msra.mxu1 %v410_v58 }
  0x63   :  { %413 = vmatprep.subr.bf16.mxu1 %v412_v60 }
  0x64   :  { %475 = vmatpush1.bf16.msra.mxu0 %v474_v59 }
  0x65   :  { %477 = vmatprep.subr.bf16.mxu0 %v476_v63 }
  0x66   :  { %415 = vmatpush1.bf16.msra.mxu1 %v414_v2 }
  0x68   :  { %479 = vmatpush1.bf16.msra.mxu0 %v478_v3 }
  0x69   :  { %254 = vmatmul.mubr.f32.vlgmr.msra.gmra.mrb[0].mxu1 %v619_v16 }
  0x6b   :  { %325 = vmatmul.mubr.f32.vlgmr.msra.gmra.mrb[0].mxu0 %v623_v20 }
 0x13c   :  { %v255_v11 = vpop.f32.mrb[0].mxu1 }
 0x13d   :  { %v256_v12 = vadd.f32 %v255_v11, %v176_v9  ;;  %v257_v13 = vpop.f32.mrb[1].mxu1 }
 0x13e   :  { %v326_v14 = vpop.f32.mrb[0].mxu0  ;;  %v258_v15 = vadd.f32 %v257_v13, %v180_v10 }
 0x13f   :  { %v328_v17 = vpop.f32.mrb[1].mxu0  ;;  %v327_v18 = vadd.f32 %v326_v14, %v256_v12 }
 0x140   :  { %v329_v16 = vadd.f32 %v328_v17, %v258_v15 }
 0x142   :  { %v333_v19 = vcombine.low %v327_v18, %v329_v16 }
 0x144   :  { %335 = vst [vmem:[#allocation7] sm:$0xff] %v333_v19 }
 0x145   :  { %546 = shalt.err (!%p543_p6)
}
 0x146   :  { %s547_s15 = scalar_lea.hbm %s647_s3, 128 }
 0x147   :  { %p548_p7 = scmp.ne.s32.totalorder %s647_s3, %s547_s15  ;;  %p551_p8 = scmp.lt.u32.totalorder %s547_s15, %s647_s3 }
 0x149   :  { %p553_p9 = pnand %p551_p8, %p548_p7 }
 0x14b   :  { %556 = shalt.err (!%p553_p9)
}
 0x14c   :  { %345 = dma.vmem_to_hbm [thread:$0]  %s343_s12, 128, %s647_s3, [#allocation4]  }
 0x14d   :  { %561 = dma.done.wait [#allocation4], 128  }
 0x14e   :  { %562 = vsyncadd [#allocation4], 4294967168 }
 0x14f   :  { %349 = vsyncpa [#allocation3], 1 }
 0x150   :  { %350 = vsyncpa [#allocation6], 1 }
 0x151   :  { %351 = vsyncpa [#allocation4], 1 }

</bundles_post_ra>
